<compile_context>
chip_gen: v6e
topology: v6e:2x2x1
jax: 0.10.0
libtpu: 0.0.40
codegen_flags: <defaults>
</compile_context>

<pallas_src>
import sys
import numpy as np
import jax
import jax.numpy as jnp
from jax.experimental import pallas as pl
from jax.experimental.pallas import tpu as pltpu

SUB_SIZE = 10      # SUB_size in the reference code
N_PAD = 128        # node-dim pad (sublane+lane dense)
D_PAD = 128        # feature-dim pad (lane dense)
# TODO(synk): graphs with N > 128 need a tiled grid (tile edge 256 on v6e/v7x, 128 on v5e,
#             "parallel" row-tile axis, VMEM budget sized for v7x's 64 MiB).


# =============================== Pallas kernels ===============================

def _layer_kernel(g_ref, h_ref, wt_ref, b_ref, h_out_ref, ug_out_ref):
    """Fused down-GCN + full-graph 2-hop (both consume the same g block)."""
    g = g_ref[...]                                           # f32 (N_PAD, N_PAD)
    # GCN.forward (drop_p = 0.0 -> Identity): h = relu(Linear(g @ h))
    # bf16 MXU operands, f32 accumulation; bias + ReLU in f32.
    gh = jnp.dot(g.astype(jnp.bfloat16), h_ref[...].astype(jnp.bfloat16),
                 preferred_element_type=jnp.float32)
    y = jnp.dot(gh.astype(jnp.bfloat16), wt_ref[...],        # wt pre-cast to bf16
                preferred_element_type=jnp.float32) + b_ref[...]
    h_out_ref[...] = jnp.maximum(y, 0.0)
    # un_g = (g.bool().float() @ g.bool().float()).bool().float()
    # 0/1 operands in bf16 with f32 accumulation: exact for the !=0 test, higher MXU rate.
    a = (g != 0).astype(jnp.bfloat16)
    a2 = jnp.dot(a, a, preferred_element_type=jnp.float32)
    ug_out_ref[...] = (a2 != 0).astype(jnp.float32)


def _pool_kernel(idx_ref, ug_ref, h_ref, g_out_ref, h_out_ref):
    """Fused node gather (one-hot MXU matmuls) + norm_g.

    idx_ref is (1, N_PAD) int32 with the selected node ids in the first m lanes and -1
    elsewhere.  ST[j, i] = (j == idx[i]) is the transposed one-hot selector; padded lanes
    (idx == -1) never match an iota row, so padded rows/cols of every product are zero.
    """
    idx_row = idx_ref[...]                                            # (1, N_PAD) int32
    rows = jax.lax.broadcasted_iota(jnp.int32, (N_PAD, N_PAD), 0)
    st = (rows == idx_row).astype(jnp.float32)                        # S^T  (N_PAD, N_PAD)
    s = st.T                                                          # S    (XLU transpose)

    # Feature gather on the MXU: h_sub[i, :] = h[idx[i], :]  (zero rows for padding).
    h_out_ref[...] = jnp.dot(s, h_ref[...], preferred_element_type=jnp.float32)

    # Adjacency gather: a_sub = S @ un_g @ S^T.  All operands are 0/1 -> exact in bf16
    # with f32 accumulation.
    s_bf = s.astype(jnp.bfloat16)
    st_bf = st.astype(jnp.bfloat16)
    ug_bf = ug_ref[...].astype(jnp.bfloat16)                          # un_g is already 0/1
    a_mid = jnp.dot(s_bf, ug_bf, preferred_element_type=jnp.float32)
    a_sub = jnp.dot(a_mid.astype(jnp.bfloat16), st_bf, preferred_element_type=jnp.float32)

    # norm_g: out[i, j] = a[i, j] / deg[j] with deg[j] = sum_k a[j, k]  (torch broadcast).
    # Row-degrees laid out along lanes via ones @ a^T (transposed-B contraction on the MXU).
    ones8 = jnp.ones((8, N_PAD), jnp.float32)
    deg8 = jax.lax.dot_general(ones8, a_sub, (((1,), (1,)), ((), ())),
                               preferred_element_type=jnp.float32)    # (8, N_PAD), rows identical
    # Padded lanes get degree 1 (their numerator is already 0 -> output stays 0).  Valid
    # zero-degree nodes keep the torch g/0 inf/nan semantics (reciprocal(0) -> inf).
    deg = jnp.where(idx_row < 0, 1.0, deg8[0:1, :])
    g_out_ref[...] = a_sub * pl.reciprocal(deg, approx=True)


# ============================ Pallas call wrappers ============================

_layer_call = pl.pallas_call(
    _layer_kernel,
    out_shape=(jax.ShapeDtypeStruct((N_PAD, D_PAD), jnp.float32),    # h_new
               jax.ShapeDtypeStruct((N_PAD, N_PAD), jnp.float32)),   # un_g
    grid=(1,),
    in_specs=[pl.BlockSpec((N_PAD, N_PAD), lambda i: (0, 0)),        # g
              pl.BlockSpec((N_PAD, D_PAD), lambda i: (0, 0)),        # h
              pl.BlockSpec((D_PAD, D_PAD), lambda i: (0, 0)),        # W^T (bf16)
              pl.BlockSpec((1, D_PAD), lambda i: (0, 0))],           # bias
    out_specs=(pl.BlockSpec((N_PAD, D_PAD), lambda i: (0, 0)),
               pl.BlockSpec((N_PAD, N_PAD), lambda i: (0, 0))),
    compiler_params=pltpu.CompilerParams(dimension_semantics=("arbitrary",)),
)

_pool_call = pl.pallas_call(
    _pool_kernel,
    out_shape=(jax.ShapeDtypeStruct((N_PAD, N_PAD), jnp.float32),    # g_new (normalized)
               jax.ShapeDtypeStruct((N_PAD, D_PAD), jnp.float32)),   # h_sub
    grid=(1,),
    in_specs=[pl.BlockSpec((1, N_PAD), lambda i: (0, 0)),            # idx (int32, -1 = pad)
              pl.BlockSpec((N_PAD, N_PAD), lambda i: (0, 0)),        # un_g
              pl.BlockSpec((N_PAD, D_PAD), lambda i: (0, 0))],       # h
    out_specs=(pl.BlockSpec((N_PAD, N_PAD), lambda i: (0, 0)),
               pl.BlockSpec((N_PAD, D_PAD), lambda i: (0, 0))),
    compiler_params=pltpu.CompilerParams(dimension_semantics=("arbitrary",)),
)


@jax.jit
def _layer_device(g_p, h_p, wt, b):
    """Fused down-GCN + full-graph 2-hop: one dispatch per layer."""
    return _layer_call(g_p, h_p, wt, b)


@jax.jit
def _pool_device(idx_row, un_g, h_p):
    """Fused gather + norm_g: one dispatch per layer, one small H2D index transfer."""
    return _pool_call(idx_row, un_g, h_p)


# ============== Host-side graph algorithmics (Subgraph node selection) ==============
# Mirrors the networkx-based selection of the reference, which also runs on CPU.
# Only the edge *pattern* matters (triangles / degree / articulation points / BFS ignore
# weights), so the host tracks a boolean pattern and never reads device results mid-loop.

def _cutting_points(B):
    """Articulation points via the same DFS as the reference `cuttingpoint`."""
    n = B.shape[0]
    edges = [(i, j) for i in range(n) for j in range(i, n) if B[i, j]]
    if not edges:
        return []
    INF = 2147483647
    link, dfn, low = {}, {}, {}
    for a, b in edges:
        link.setdefault(a, [])
        link.setdefault(b, [])
        link[a].append(b)
        link[b].append(a)
        dfn[a], dfn[b] = INF, INF
        low[a], low[b] = INF, INF
    cutting_points = []
    global_time = [0]
    sys.setrecursionlimit(10000)

    def dfs(cur, prev, root):
        global_time[0] += 1
        dfn[cur], low[cur] = global_time[0], global_time[0]
        children_cnt = 0
        flag = False
        for nxt in link[cur]:
            if nxt != prev:
                if dfn[nxt] == INF:
                    children_cnt += 1
                    dfs(nxt, cur, root)
                    if cur != root and low[nxt] >= dfn[cur]:
                        flag = True
                    low[cur] = min(low[cur], low[nxt])
                else:
                    low[cur] = min(low[cur], dfn[nxt])
        if flag or (cur == root and children_cnt >= 2):
            cutting_points.append(cur)

    dfs(edges[0][0], None, edges[0][0])
    return cutting_points


def _bfs(B, s):
    queue = [s]
    seen = {s}
    while queue:
        v = queue.pop(0)
        for w in np.nonzero(B[v])[0].tolist():
            if w not in seen:
                queue.append(w)
                seen.add(w)
                if len(seen) == SUB_SIZE:
                    return list(seen)
    return list(seen)


def _host_select(P):
    """P: (n, n) bool adjacency pattern. Node selection identical to the nx-based reference."""
    off = P.astype(np.float64).copy()
    np.fill_diagonal(off, 0.0)
    tri = np.rint(np.diag(off @ off @ off) / 2.0).astype(np.int64)
    deg = off.sum(axis=1).astype(np.int64) + 2 * np.diag(P).astype(np.int64)  # self-loop counts 2
    star = [i for i in range(len(tri)) if tri[i] == 0]
    h_star = sorted(star, key=lambda i: deg[i], reverse=True)[:int(0.5 * len(star))]
    piv = [i for i in range(len(tri)) if tri[i] != 0]
    s_pivot = sorted(piv, key=lambda i: deg[i], reverse=True)[:int(0.05 * len(piv))]
    cuts = _cutting_points(P)
    idx = list(set(h_star + s_pivot + cuts))
    subs = [_bfs(P, s) for s in idx]      # returned by the reference, unused downstream
    return idx, subs


# ================================ GraphUnet ==================================

class GraphUnetPallas:
    """GraphUnet(ks, in_dim, out_dim, dim, act=ReLU, drop_p=0.0) forward pass."""

    def __init__(self, ks, in_dim, out_dim, dim, drop_p=0.0, seed=0):
        # TODO(synk): dropout with p > 0 (training mode) not implemented; drop_p = 0.0 -> Identity.
        del in_dim, out_dim, drop_p               # unused by GraphUnet.forward (all GCNs dim->dim)
        assert dim <= D_PAD, "feature dim > 128 needs tiled kernels"
        self.ks = ks
        self.l_n = len(ks)
        self.dim = dim
        key = jax.random.PRNGKey(seed)
        keys = jax.random.split(key, 2 * (self.l_n + 1))
        bound = 1.0 / np.sqrt(dim)                # torch nn.Linear default init range

        def init_linear(kw, kb):
            w = jax.random.uniform(kw, (dim, dim), jnp.float32, -bound, bound)
            b = jax.random.uniform(kb, (dim,), jnp.float32, -bound, bound)
            # Hoist layout work out of the hot path: pre-transpose to (in, out), pre-pad to
            # lane-dense (128, 128) / (1, 128) and pre-cast the weight to bf16 (MXU-native).
            wt = jnp.zeros((D_PAD, D_PAD), jnp.float32).at[:dim, :dim].set(w.T)
            wt = wt.astype(jnp.bfloat16)
            bp = jnp.zeros((1, D_PAD), jnp.float32).at[0, :dim].set(b)
            return wt, bp

        self.down_params = [init_linear(keys[2 * i], keys[2 * i + 1]) for i in range(self.l_n)]
        self.bottom_params = init_linear(keys[2 * self.l_n], keys[2 * self.l_n + 1])

    def __call__(self, g, h):
        n = g.shape[0]
        d = h.shape[1]
        assert n <= N_PAD and d == self.dim, "graph too large for the fixed 128-pad kernels"
        # Pad once to the fixed lane-dense slabs; padded rows/cols never influence valid rows.
        g_p = jnp.zeros((N_PAD, N_PAD), jnp.float32).at[:n, :n].set(g.astype(jnp.float32))
        h_p = jnp.zeros((N_PAD, D_PAD), jnp.float32).at[:n, :d].set(h.astype(jnp.float32))

        P = np.asarray(jax.device_get(g)) != 0    # host-tracked boolean edge pattern
        indices_list = []
        n_valid = n

        for i in range(self.l_n):
            wt, bp = self.down_params[i]
            # Dispatch device work (fused GCN + full-graph 2-hop) BEFORE the host graph walk
            # so the TPU computes while Python runs triangles / articulation points / BFS.
            h_p, un_g = _layer_device(g_p, h_p, wt, bp)

            idx, _subs = _host_select(P)          # host node selection (overlaps device work)
            assert len(idx) > 0, "pooling selected no nodes"
            m = len(idx)
            idx_row = np.full((1, N_PAD), -1, np.int32)   # -1 sentinel encodes padding (no m)
            idx_row[0, :m] = np.asarray(idx, dtype=np.int32)

            # Single fused pool kernel: in-kernel one-hot gather + norm_g (one dispatch,
            # one small H2D transfer per layer).
            g_p, h_p = _pool_device(jnp.asarray(idx_row), un_g, h_p)

            # Host pattern of the pooled graph (2-hop pattern gathered) for the next layer's
            # walk — structure only, so no device->host sync is needed inside the loop.
            P2 = (P.astype(np.int32) @ P.astype(np.int32)) > 0
            P = P2[np.ix_(idx, idx)]
            indices_list.append(idx)
            n_valid = m

        wt, bp = self.bottom_params
        h_p, _ = _layer_device(g_p, h_p, wt, bp)  # bottom GCN (extra 2-hop output discarded)
        return h_p[:n_valid, :self.dim]


# =================================== main ====================================

def build_adjacency(n=16):
    """Deterministic test graph: a K6 clique (triangles) with trees hanging off node 0
    (triangle-free nodes + articulation points), so pooling always selects a non-empty set."""
    A = np.zeros((n, n), np.float32)
    for i in range(6):
        for j in range(6):
            if i != j:
                A[i, j] = 1.0
    tree_edges = [(0, 6), (6, 7), (0, 8), (8, 9), (8, 10), (9, 11),
                  (10, 12), (12, 13), (12, 14), (14, 15)]
    for a, b in tree_edges:
        A[a, b] = 1.0
        A[b, a] = 1.0
    return A


if __name__ == "__main__":
    N, DIM = 16, 32
    key = jax.random.PRNGKey(0)
    k_h, _ = jax.random.split(key)

    g = jnp.asarray(build_adjacency(N), dtype=jnp.float32)   # (16, 16) adjacency
    h = jax.random.normal(k_h, (N, DIM), dtype=jnp.float32)  # (16, 32) node features

    net = GraphUnetPallas(ks=[0.9, 0.7], in_dim=DIM, out_dim=DIM, dim=DIM, drop_p=0.0, seed=0)
    out = net(g, h)
    out = jax.block_until_ready(out)

    assert out.ndim == 2 and out.shape[1] == DIM and out.shape[0] >= 1
    assert bool(jnp.all(jnp.isfinite(out)))
    print("KERNEL_OK")
</pallas_src>

<mosaic_0001>
module attributes {stable_mosaic.version = 11 : i64} {
  func.func @_layer_kernel(%arg0: i32, %arg1: memref<128x128xf32, #tpu.memory_space<vmem>>, %arg2: memref<128x128xf32, #tpu.memory_space<vmem>>, %arg3: memref<128x128xbf16, #tpu.memory_space<vmem>>, %arg4: memref<1x128xf32, #tpu.memory_space<vmem>>, %arg5: memref<128x128xf32, #tpu.memory_space<vmem>>, %arg6: memref<128x128xf32, #tpu.memory_space<vmem>>) attributes {dimension_semantics = [#tpu.dimension_semantics<arbitrary>], iteration_bounds = array<i64: 1>, scalar_prefetch = 0 : i64, scratch_operands = 0 : i64, tpu.core_type = #tpu.core_type<tc>, window_params = [{pipeline_mode = #tpu.pipeline_mode<synchronous>, transform_indices = @transform_0, window_bounds = array<i64: 128, 128>}, {pipeline_mode = #tpu.pipeline_mode<synchronous>, transform_indices = @transform_1, window_bounds = array<i64: 128, 128>}, {pipeline_mode = #tpu.pipeline_mode<synchronous>, transform_indices = @transform_2, window_bounds = array<i64: 128, 128>}, {pipeline_mode = #tpu.pipeline_mode<synchronous>, transform_indices = @transform_3, window_bounds = array<i64: 1, 128>}, {pipeline_mode = #tpu.pipeline_mode<synchronous>, transform_indices = @transform_4, window_bounds = array<i64: 128, 128>}, {pipeline_mode = #tpu.pipeline_mode<synchronous>, transform_indices = @transform_5, window_bounds = array<i64: 128, 128>}]} {
    %c0 = arith.constant 0 : index
    %c0_0 = arith.constant 0 : index
    %0 = vector.load %arg1[%c0, %c0_0] : memref<128x128xf32, #tpu.memory_space<vmem>>, vector<128x128xf32>
    %1 = arith.truncf %0 : vector<128x128xf32> to vector<128x128xbf16>
    %c0_1 = arith.constant 0 : index
    %c0_2 = arith.constant 0 : index
    %2 = vector.load %arg2[%c0_1, %c0_2] : memref<128x128xf32, #tpu.memory_space<vmem>>, vector<128x128xf32>
    %3 = arith.truncf %2 : vector<128x128xf32> to vector<128x128xbf16>
    %cst = arith.constant dense<0.000000e+00> : vector<128x128xf32>
    %4 = tpu.matmul %1, %3, %cst {dimension_numbers = #tpu.dot_dimension_numbers<[1], [0], [0], [1], [0, 0, 1, 1], [], []>} : vector<128x128xbf16>, vector<128x128xbf16>, vector<128x128xf32> -> vector<128x128xf32>
    %5 = arith.truncf %4 : vector<128x128xf32> to vector<128x128xbf16>
    %c0_3 = arith.constant 0 : index
    %c0_4 = arith.constant 0 : index
    %6 = vector.load %arg3[%c0_3, %c0_4] : memref<128x128xbf16, #tpu.memory_space<vmem>>, vector<128x128xbf16>
    %cst_5 = arith.constant dense<0.000000e+00> : vector<128x128xf32>
    %7 = tpu.matmul %5, %6, %cst_5 {dimension_numbers = #tpu.dot_dimension_numbers<[1], [0], [0], [1], [0, 0, 1, 1], [], []>} : vector<128x128xbf16>, vector<128x128xbf16>, vector<128x128xf32> -> vector<128x128xf32>
    %c0_6 = arith.constant 0 : index
    %c0_7 = arith.constant 0 : index
    %8 = vector.load %arg4[%c0_6, %c0_7] : memref<1x128xf32, #tpu.memory_space<vmem>>, vector<1x128xf32>
    %9 = vector.broadcast %8 : vector<1x128xf32> to vector<128x128xf32>
    %10 = arith.addf %7, %9 : vector<128x128xf32>
    %cst_8 = arith.constant 0.000000e+00 : f32
    %11 = vector.broadcast %cst_8 : f32 to vector<128x128xf32>
    %12 = arith.maximumf %10, %11 : vector<128x128xf32>
    %c0_9 = arith.constant 0 : index
    %c0_10 = arith.constant 0 : index
    %13 = vector.load %arg5[%c0_9, %c0_10] : memref<128x128xf32, #tpu.memory_space<vmem>>, vector<128x128xf32>
    tpu.vector_store %arg5[%c0_9, %c0_10], %12 {strides = array<i32>} : memref<128x128xf32, #tpu.memory_space<vmem>>, vector<128x128xf32>,
    %cst_11 = arith.constant 0.000000e+00 : f32
    %14 = vector.broadcast %cst_11 : f32 to vector<128x128xf32>
    %15 = arith.cmpf one, %0, %14 : vector<128x128xf32>
    %16 = arith.extui %15 : vector<128x128xi1> to vector<128x128xi32>
    %17 = arith.sitofp %16 : vector<128x128xi32> to vector<128x128xf32>
    %18 = arith.truncf %17 : vector<128x128xf32> to vector<128x128xbf16>
    %cst_12 = arith.constant dense<0.000000e+00> : vector<128x128xf32>
    %19 = tpu.matmul %18, %18, %cst_12 {dimension_numbers = #tpu.dot_dimension_numbers<[1], [0], [0], [1], [0, 0, 1, 1], [], []>} : vector<128x128xbf16>, vector<128x128xbf16>, vector<128x128xf32> -> vector<128x128xf32>
    %cst_13 = arith.constant 0.000000e+00 : f32
    %20 = vector.broadcast %cst_13 : f32 to vector<128x128xf32>
    %21 = arith.cmpf one, %19, %20 : vector<128x128xf32>
    %22 = arith.extui %21 : vector<128x128xi1> to vector<128x128xi32>
    %23 = arith.sitofp %22 : vector<128x128xi32> to vector<128x128xf32>
    %c0_14 = arith.constant 0 : index
    %c0_15 = arith.constant 0 : index
    %24 = vector.load %arg6[%c0_14, %c0_15] : memref<128x128xf32, #tpu.memory_space<vmem>>, vector<128x128xf32>
    tpu.vector_store %arg6[%c0_14, %c0_15], %23 {strides = array<i32>} : memref<128x128xf32, #tpu.memory_space<vmem>>, vector<128x128xf32>,
    return
  }
  func.func @transform_0(%arg0: i32) -> (i32, i32) {
    %c0_i32 = arith.constant 0 : i32
    %c0_i32_0 = arith.constant 0 : i32
    %c0_i32_1 = arith.constant 0 : i32
    return %c0_i32, %c0_i32_0 : i32, i32
  }
  func.func @transform_1(%arg0: i32) -> (i32, i32) {
    %c0_i32 = arith.constant 0 : i32
    %c0_i32_0 = arith.constant 0 : i32
    %c0_i32_1 = arith.constant 0 : i32
    return %c0_i32, %c0_i32_0 : i32, i32
  }
  func.func @transform_2(%arg0: i32) -> (i32, i32) {
    %c0_i32 = arith.constant 0 : i32
    %c0_i32_0 = arith.constant 0 : i32
    %c0_i32_1 = arith.constant 0 : i32
    return %c0_i32, %c0_i32_0 : i32, i32
  }
  func.func @transform_3(%arg0: i32) -> (i32, i32) {
    %c0_i32 = arith.constant 0 : i32
    %c0_i32_0 = arith.constant 0 : i32
    %c0_i32_1 = arith.constant 0 : i32
    return %c0_i32, %c0_i32_0 : i32, i32
  }
  func.func @transform_4(%arg0: i32) -> (i32, i32) {
    %c0_i32 = arith.constant 0 : i32
    %c0_i32_0 = arith.constant 0 : i32
    %c0_i32_1 = arith.constant 0 : i32
    return %c0_i32, %c0_i32_0 : i32, i32
  }
  func.func @transform_5(%arg0: i32) -> (i32, i32) {
    %c0_i32 = arith.constant 0 : i32
    %c0_i32_0 = arith.constant 0 : i32
    %c0_i32_1 = arith.constant 0 : i32
    return %c0_i32, %c0_i32_0 : i32, i32
  }
}

</mosaic_0001>

<bundles_post_ra>
// kernel: _layer_device.1
= control target key start
LH: loop header
LB: loop body
LE: loop exit
PB: predicated region body
PF: predicated region fallthrough
CT: control target
= control target key end

     0   :  { %11 = vsyncpa [#allocation3], 0  ;;  %s1300_s0 = inlined_call_operand.hbm [shape: f32[128,128], index: 0, kind: input, shape index: {}]   ;;  %s1301_s1 = inlined_call_operand.hbm [shape: f32[128,128], index: 1, kind: input, shape index: {}]   ;;  %s1302_s2 = inlined_call_operand.hbm [shape: bf16[128,128], index: 2, kind: input, shape index: {}]   ;;  %s1303_s3 = inlined_call_operand.vmem [shape: f32[1,128], index: 3, kind: input, shape index: {}]   ;;  %s1304_s4 = inlined_call_operand.hbm [shape: f32[128,128], index: 4, kind: output, shape index: {0}]   ;;  %s1305_s5 = inlined_call_operand.hbm [shape: f32[128,128], index: 5, kind: output, shape index: {1}]  }
   0x1   :  { %12 = vsyncpa [#allocation6], 0 }
   0x2   :  { %13 = vsyncpa [#allocation4], 0 }
   0x3   :  { %14 = vsyncpa [#allocation10], 0  ;;  %s1027_s18 = smov [#allocation5]   ;;  %s1028_s20 = smov [#allocation2]  }
   0x4   :  { %s32_s19 = sshll.u32 %s1027_s18, 4  ;;  %s20_s21 = sshll.u32 %s1028_s20, 4  ;;  %s33_s19 = int_to_ptr.vmem [resolvable:$true] %s32_s19  ;;  %s21_s21 = int_to_ptr.vmem [resolvable:$true] %s20_s21 }
   0x5   :  { %s927_s22 = scalar_lea.vmem %s33_s19, 2048  ;;  %p932_p1 = scmp.lt.s32.totalorder %s33_s19, %s33_s19 }
   0x6   :  { %p928_p0 = scmp.ne.s32.totalorder %s33_s19, %s927_s22  ;;  %p933_p2 = scmp.lt.s32.totalorder %s927_s22, %s927_s22 }
   0x8   :  { %p934_p3 = por %p933_p2, %p932_p1 }
   0xa   :  { %p935_p4 = pnand %p934_p3, %p928_p0 }
   0xc   :  { %938 = shalt.err (!%p935_p4)
}
   0xd   :  { %s1029_s23 = smov 128   ;;  %s1030_s24 = smov 8  }
   0xe   :  { %38 = dma.hbm_to_vmem [thread:$0]  %s1301_s1, 2048, %s33_s19, [#allocation6], %s1029_s23, %s1029_s23, %s1030_s24  }
   0xf   :  { %s947_s27 = scalar_lea.vmem %s21_s21, 2048  ;;  %p952_p6 = scmp.lt.s32.totalorder %s21_s21, %s21_s21 }
  0x10   :  { %p948_p5 = scmp.ne.s32.totalorder %s21_s21, %s947_s27  ;;  %p953_p7 = scmp.lt.s32.totalorder %s947_s27, %s947_s27 }
  0x12   :  { %p954_p8 = por %p953_p7, %p952_p6 }
  0x14   :  { %p955_p9 = pnand %p954_p8, %p948_p5 }
  0x16   :  { %958 = shalt.err (!%p955_p9)
}
  0x17   :  { %26 = dma.hbm_to_vmem [thread:$0]  %s1300_s0, 2048, %s21_s21, [#allocation3], %s1029_s23, %s1029_s23, %s1030_s24  }
  0x18   :  { %s1031_s30 = smov [#allocation7]  }
  0x19   :  { %s44_s6 = sshll.u32 %s1031_s30, 4  ;;  %s45_s6 = int_to_ptr.vmem [resolvable:$true] %s44_s6 }
  0x1a   :  { %s967_s7 = scalar_lea.vmem %s45_s6, 1024  ;;  %p972_p11 = scmp.lt.s32.totalorder %s45_s6, %s45_s6 }
  0x1b   :  { %p968_p10 = scmp.ne.s32.totalorder %s45_s6, %s967_s7  ;;  %p973_p12 = scmp.lt.s32.totalorder %s967_s7, %s967_s7 }
  0x1d   :  { %p974_p13 = por %p973_p12, %p972_p11 }
  0x1f   :  { %p975_p0 = pnand %p974_p13, %p968_p10 }
  0x21   :  { %978 = shalt.err (!%p975_p0)
}
  0x22   :  { %s1032_s1 = smov 64   ;;  %s1033_s8 = smov 4  }
  0x23   :  { %50 = dma.hbm_to_vmem [thread:$0]  %s1302_s2, 1024, %s45_s6, [#allocation6], %s1032_s1, %s1032_s1, %s1033_s8  }
  0x24   :  { %1019 = dma.done.wait [#allocation3], 2048  }
  0x25   :  { %1020 = vsyncadd [#allocation3], 4294965248 }
  0x26   :  { %1021 = dma.done.wait [#allocation6], 3072  }
  0x27   :  { %1022 = vsyncadd [#allocation6], 4294964224  ;;  %v101_v0 = vld [vmem:[#allocation5 + $0x70] sm:$0xff]  ;;  %v102_v1 = vld [vmem:[#allocation5 + $0x78] sm:$0xff]  ;;  %v1034_v57 = vmov 1.0|1.0  }
  0x28   :  { %v99_v2 = vld [vmem:[#allocation5 + $0x60] sm:$0xff]  ;;  %v110_v3 = vpack.c.bf16 %v102_v1, %v101_v0  ;;  %v100_v4 = vld [vmem:[#allocation5 + $0x68] sm:$0xff]  ;;  %v97_v6 = vld [vmem:[#allocation5 + $0x50] sm:$0xff] }
  0x29   :  { %v109_v5 = vpack.c.bf16 %v100_v4, %v99_v2  ;;  %v98_v7 = vld [vmem:[#allocation5 + $0x58] sm:$0xff]  ;;  %v63_v9 = vld [vmem:[#allocation2] sm:$0xff]  ;;  %v64_v10 = vld [vmem:[#allocation2 + $0x8] sm:$0xff] }
  0x2a   :  { %788 = vmatprep.subr.bf16.mxu0 %v110_v3  ;;  %v108_v8 = vpack.c.bf16 %v98_v7, %v97_v6  ;;  %v95_v11 = vld [vmem:[#allocation5 + $0x40] sm:$0xff]  ;;  %v96_v12 = vld [vmem:[#allocation5 + $0x48] sm:$0xff]  ;;  %v79_v13 = vpack.c.bf16 %v64_v10, %v63_v9  ;;  %vm416_vm0 = vcmp.ne.f32.partialorder %v63_v9, 0.0  ;;  %vm417_vm1 = vcmp.ne.f32.partialorder %v64_v10, 0.0  ;;  %v93_v16 = vld [vmem:[#allocation5 + $0x30] sm:$0xff] }
  0x2b   :  { %789 = vmatpush3.bf16.msra.mxu0 %v110_v3  ;;  %vm1083_vm2 = vmpackc.low %vm417_vm1, %vm416_vm0  ;;  %v107_v15 = vpack.c.bf16 %v96_v12, %v95_v11  ;;  %v94_v17 = vld [vmem:[#allocation5 + $0x38] sm:$0xff]  ;;  %v91_v18 = vld [vmem:[#allocation5 + $0x20] sm:$0xff] }
  0x2c   :  { %790 = vmatprep.subr.bf16.mxu0 %v109_v5  ;;  %804 = vmatprep.mubr.bf16.mxu0 %v79_v13  ;;  %v911_v19 = vld [vmem:[#allocation7 + $0x38] sm:$0xff]   ;;  %v912_v20 = vld [vmem:[#allocation7 + $0x30] sm:$0xff]   ;;  %v106_v21 = vpack.c.bf16 %v94_v17, %v93_v16  ;;  %v92_v22 = vld [vmem:[#allocation5 + $0x28] sm:$0xff] }
  0x2d   :  { %820 = vmatprep.subr.bf16.mxu1 %v911_v19  ;;  %v913_v23 = vld [vmem:[#allocation7 + $0x28] sm:$0xff]   ;;  %v105_v24 = vpack.c.bf16 %v92_v22, %v91_v18  ;;  %v89_v25 = vld [vmem:[#allocation5 + $0x10] sm:$0xff]  ;;  %v90_v26 = vld [vmem:[#allocation5 + $0x18] sm:$0xff] }
  0x2e   :  { %821 = vmatpush3.bf16.msra.mxu1 %v911_v19  ;;  %v914_v27 = vld [vmem:[#allocation7 + $0x20] sm:$0xff]   ;;  %v104_v28 = vpack.c.bf16 %v90_v26, %v89_v25  ;;  %v88_v30 = vld [vmem:[#allocation5 + $0x8] sm:$0xff]  ;;  %v915_v31 = vld [vmem:[#allocation7 + $0x18] sm:$0xff]  }
  0x2f   :  { %791 = vmatpush3.bf16.msra.mxu0 %v109_v5  ;;  %822 = vmatprep.subr.bf16.mxu1 %v912_v20  ;;  %v87_v29 = vld [vmem:[#allocation5] sm:$0xff]  ;;  %v1087_v33 = vld [vmem:[#allocation2 + $0x10] sm:$0xff]  ;;  %v1089_v34 = vld [vmem:[#allocation2 + $0x18] sm:$0xff] }
  0x30   :  { %792 = vmatprep.subr.bf16.mxu0 %v108_v8  ;;  %v103_v32 = vpack.c.bf16 %v88_v30, %v87_v29  ;;  %v916_v35 = vld [vmem:[#allocation7 + $0x10] sm:$0xff]   ;;  %v1091_v36 = vld [vmem:[#allocation2 + $0x20] sm:$0xff]  ;;  %v1093_v37 = vld [vmem:[#allocation2 + $0x28] sm:$0xff]  ;;  %v80_v38 = vpack.c.bf16 %v1089_v34, %v1087_v33  ;;  %v1035_v29 = vmov 0.0  }
  0x31   :  { %v81_v39 = vpack.c.bf16 %v1093_v37, %v1091_v36  ;;  %v69_v40 = vld [vmem:[#allocation2 + $0x30] sm:$0xff]  ;;  %v70_v41 = vld [vmem:[#allocation2 + $0x38] sm:$0xff]  ;;  %v71_v42 = vld [vmem:[#allocation2 + $0x40] sm:$0xff] }
  0x32   :  { %823 = vmatpush3.bf16.msra.mxu1 %v912_v20  ;;  %v72_v43 = vld [vmem:[#allocation2 + $0x48] sm:$0xff]  ;;  %v82_v44 = vpack.c.bf16 %v70_v41, %v69_v40  ;;  %v73_v46 = vld [vmem:[#allocation2 + $0x50] sm:$0xff]  ;;  %v74_v47 = vld [vmem:[#allocation2 + $0x58] sm:$0xff]  ;;  %vm424_vm12 = vcmp.ne.f32.partialorder %v71_v42, 0.0  ;;  %vm422_vm15 = vcmp.ne.f32.partialorder %v69_v40, 0.0  ;;  %vm423_vm0 = vcmp.ne.f32.partialorder %v70_v41, 0.0 }
  0x33   :  { %793 = vmatpush3.bf16.msra.mxu0 %v108_v8  ;;  %824 = vmatprep.subr.bf16.mxu1 %v913_v23  ;;  %v83_v45 = vpack.c.bf16 %v72_v43, %v71_v42  ;;  %v75_v48 = vld [vmem:[#allocation2 + $0x60] sm:$0xff]  ;;  %v76_v49 = vld [vmem:[#allocation2 + $0x68] sm:$0xff]  ;;  %v84_v50 = vpack.c.bf16 %v74_v47, %v73_v46  ;;  %v77_v52 = vld [vmem:[#allocation2 + $0x70] sm:$0xff]  ;;  %vm426_vm9 = vcmp.ne.f32.partialorder %v73_v46, 0.0  ;;  %vm427_vm10 = vcmp.ne.f32.partialorder %v74_v47, 0.0 }
  0x34   :  { %794 = vmatprep.subr.bf16.mxu0 %v107_v15  ;;  %v85_v51 = vpack.c.bf16 %v76_v49, %v75_v48  ;;  %v78_v53 = vld [vmem:[#allocation2 + $0x78] sm:$0xff]  ;;  %vm430_vm3 = vcmp.ne.f32.partialorder %v77_v52, 0.0  ;;  %v917_v55 = vld [vmem:[#allocation7 + $0x8] sm:$0xff]   ;;  %vm428_vm6 = vcmp.ne.f32.partialorder %v75_v48, 0.0  ;;  %vm429_vm7 = vcmp.ne.f32.partialorder %v76_v49, 0.0  ;;  %v918_v58 = vld [vmem:[#allocation7] sm:$0xff]  }
  0x35   :  { %v86_v54 = vpack.c.bf16 %v78_v53, %v77_v52  ;;  %vm431_vm4 = vcmp.ne.f32.partialorder %v78_v53, 0.0  ;;  %vm1112_vm8 = vmpackc.low %vm429_vm7, %vm428_vm6  ;;  %vm425_vm13 = vcmp.ne.f32.partialorder %v72_v43, 0.0  ;;  %vm418_vm7 = vcmp.ne.f32.partialorder %v1087_v33, 0.0  ;;  %v1262_v42 = vld [vmem:[%s1303_s3] ss:$0 sm:$0xff]  ;;  %s1036_s3 = smov [#allocation8]  }
  0x36   :  { %825 = vmatpush3.bf16.msra.mxu1 %v913_v23  ;;  %vm1099_vm5 = vmpackc.low %vm431_vm4, %vm430_vm3  ;;  %vm420_vm3 = vcmp.ne.f32.partialorder %v1091_v36, 0.0  ;;  %vm421_vm4 = vcmp.ne.f32.partialorder %v1093_v37, 0.0  ;;  %s638_s11 = sshll.u32 %s1036_s3, 4  ;;  %s639_s11 = int_to_ptr.vmem [resolvable:$true] %s638_s11 }
  0x37   :  { %795 = vmatpush3.bf16.msra.mxu0 %v107_v15  ;;  %826 = vmatprep.subr.bf16.mxu1 %v914_v27  ;;  %vm1125_vm11 = vmpackc.low %vm427_vm10, %vm426_vm9  ;;  %vm419_vm9 = vcmp.ne.f32.partialorder %v1089_v34, 0.0  ;;  %s979_s12 = scalar_lea.vmem %s639_s11, 2048  ;;  %p984_p2 = scmp.lt.s32.totalorder %s639_s11, %s639_s11 }
  0x38   :  { %796 = vmatprep.subr.bf16.mxu0 %v106_v21  ;;  %vm1135_vm14 = vmpackc.low %vm425_vm13, %vm424_vm12  ;;  %p980_p1 = scmp.ne.s32.totalorder %s639_s11, %s979_s12  ;;  %p985_p3 = scmp.lt.s32.totalorder %s979_s12, %s979_s12 }
  0x39   :  { %vm1145_vm1 = vmpackc.low %vm423_vm0, %vm422_vm15 }
  0x3a   :  { %827 = vmatpush3.bf16.msra.mxu1 %v914_v27  ;;  %vm1157_vm6 = vmpackc.low %vm421_vm4, %vm420_vm3  ;;  %p986_p4 = por %p985_p3, %p984_p2 }
  0x3b   :  { %797 = vmatpush3.bf16.msra.mxu0 %v106_v21  ;;  %828 = vmatprep.subr.bf16.mxu1 %v915_v31  ;;  %vm1169_vm10 = vmpackc.low %vm419_vm9, %vm418_vm7 }
  0x3c   :  { %798 = vmatprep.subr.bf16.mxu0 %v105_v24  ;;  %p987_p5 = pnand %p986_p4, %p980_p1 }
  0x3e   :  { %829 = vmatpush3.bf16.msra.mxu1 %v915_v31 }
  0x3f   :  { %799 = vmatpush3.bf16.msra.mxu0 %v105_v24  ;;  %830 = vmatprep.subr.bf16.mxu1 %v916_v35 }
  0x40   :  { %800 = vmatprep.subr.bf16.mxu0 %v104_v28 }
  0x42   :  { %831 = vmatpush3.bf16.msra.mxu1 %v916_v35 }
  0x43   :  { %801 = vmatpush3.bf16.msra.mxu0 %v104_v28  ;;  %832 = vmatprep.subr.bf16.mxu1 %v917_v55 }
  0x44   :  { %802 = vmatprep.subr.bf16.mxu0 %v103_v32 }
  0x46   :  { %833 = vmatpush3.bf16.msra.mxu1 %v917_v55 }
  0x47   :  { %803 = vmatpush3.bf16.msra.mxu0 %v103_v32  ;;  %834 = vmatprep.subr.bf16.mxu1 %v918_v58 }
  0x48   :  { %852 = vmatprep.subr.msk.bf16.mxu0 %vm1099_vm5, %v1034_v57 }
  0x4a   :  { %805 = vmatmul.mubr.bf16.vlgmr.msra.gmra.mxu0 %v80_v38  ;;  %835 = vmatpush3.bf16.msra.mxu1 %v918_v58 }
  0x4b   :  { %808 = vmatprep.mubr.bf16.mxu0 %v81_v39  ;;  %853 = vmatpush3.bf16.msk.msra.mxu0 %vm1099_vm5, %v1034_v57 }
  0x4c   :  { %854 = vmatprep.subr.msk.bf16.mxu0 %vm1112_vm8, %v1034_v57  ;;  %884 = vmatprep.subr.msk.bf16.mxu1 %vm1099_vm5, %v1034_v57 }
  0x4f   :  { %855 = vmatpush3.bf16.msk.msra.mxu0 %vm1112_vm8, %v1034_v57 }
  0x50   :  { %856 = vmatprep.subr.msk.bf16.mxu0 %vm1125_vm11, %v1034_v57 }
  0x52   :  { %809 = vmatmul.mubr.bf16.gmra.mxu0 %v82_v44 }
  0x53   :  { %812 = vmatprep.mubr.bf16.mxu0 %v83_v45  ;;  %857 = vmatpush3.bf16.msk.msra.mxu0 %vm1125_vm11, %v1034_v57 }
  0x54   :  { %858 = vmatprep.subr.msk.bf16.mxu0 %vm1135_vm14, %v1034_v57 }
  0x57   :  { %859 = vmatpush3.bf16.msk.msra.mxu0 %vm1135_vm14, %v1034_v57 }
  0x58   :  { %860 = vmatprep.subr.msk.bf16.mxu0 %vm1145_vm1, %v1034_v57 }
  0x5a   :  { %813 = vmatmul.mubr.bf16.gmra.mxu0 %v84_v50 }
  0x5b   :  { %816 = vmatprep.mubr.bf16.mxu0 %v85_v51  ;;  %861 = vmatpush3.bf16.msk.msra.mxu0 %vm1145_vm1, %v1034_v57 }
  0x5c   :  { %862 = vmatprep.subr.msk.bf16.mxu0 %vm1157_vm6, %v1034_v57 }
  0x5f   :  { %863 = vmatpush3.bf16.msk.msra.mxu0 %vm1157_vm6, %v1034_v57 }
  0x60   :  { %864 = vmatprep.subr.msk.bf16.mxu0 %vm1169_vm10, %v1034_v57 }
  0x62   :  { %817 = vmatmul.mubr.bf16.gmra.mxu0 %v86_v54 }
  0x63   :  { %868 = vmatprep.mubr.msk.bf16.mxu0 %vm1083_vm2, %v1034_v57  ;;  %865 = vmatpush3.bf16.msk.msra.mxu0 %vm1169_vm10, %v1034_v57 }
  0x64   :  { %866 = vmatprep.subr.msk.bf16.mxu0 %vm1083_vm2, %v1034_v57 }
  0x67   :  { %867 = vmatpush3.bf16.msk.msra.mxu0 %vm1083_vm2, %v1034_v57 }
  0x6a   :  { %869 = vmatmul.mubr.msk.bf16.vlgmr.msra.gmra.mxu0 %vm1169_vm10, %v1034_v57 }
  0x6b   :  { %872 = vmatprep.mubr.msk.bf16.mxu0 %vm1157_vm6, %v1034_v57 }
  0x72   :  { %873 = vmatmul.mubr.msk.bf16.gmra.mxu0 %vm1145_vm1, %v1034_v57 }
 0x10a   :  { %v806_v1 = vpop.f32.mrf.mxu0 }
 0x10c   :  { %v145_v2 = vpop.f32.mrf.mxu0 }
 0x10e   :  { %v807_v3 = vpop.f32.mrf.mxu0 }
 0x10f   :  { %v209_v6 = vpack.c.bf16 %v807_v3, %v806_v1 }
 0x110   :  { %v148_v4 = vpop.f32.mrf.mxu0 }
 0x111   :  { %v208_v5 = vpack.c.bf16 %v148_v4, %v145_v2 }
 0x112   :  { %v810_v7 = vpop.f32.mrf.mxu0 }
 0x113   :  { %836 = vmatprep.mubr.bf16.mxu1 %v208_v5 }
 0x114   :  { %v161_v8 = vpop.f32.mrf.mxu0  ;;  %837 = vmatmul.mubr.bf16.vlgmr.msra.gmra.mxu1 %v209_v6 }
 0x115   :  { %892 = vmatpush3.bf16.msk.msra.mxu1 %vm1099_vm5, %v1034_v57 }
 0x116   :  { %v811_v9 = vpop.f32.mrf.mxu0  ;;  %885 = vmatprep.subr.msk.bf16.mxu1 %vm1112_vm8, %v1034_v57 }
 0x117   :  { %v211_v12 = vpack.c.bf16 %v811_v9, %v810_v7 }
 0x118   :  { %v164_v10 = vpop.f32.mrf.mxu0 }
 0x119   :  { %v210_v11 = vpack.c.bf16 %v164_v10, %v161_v8  ;;  %893 = vmatpush3.bf16.msk.msra.mxu1 %vm1112_vm8, %v1034_v57 }
 0x11a   :  { %v814_v13 = vpop.f32.mrf.mxu0  ;;  %886 = vmatprep.subr.msk.bf16.mxu1 %vm1125_vm11, %v1034_v57 }
 0x11b   :  { %840 = vmatprep.mubr.bf16.mxu1 %v210_v11 }
 0x11c   :  { %v177_v15 = vpop.f32.mrf.mxu0  ;;  %841 = vmatmul.mubr.bf16.gmra.mxu1 %v211_v12 }
 0x11d   :  { %894 = vmatpush3.bf16.msk.msra.mxu1 %vm1125_vm11, %v1034_v57 }
 0x11e   :  { %v815_v16 = vpop.f32.mrf.mxu0  ;;  %887 = vmatprep.subr.msk.bf16.mxu1 %vm1135_vm14, %v1034_v57 }
 0x11f   :  { %v213_v19 = vpack.c.bf16 %v815_v16, %v814_v13 }
 0x120   :  { %v180_v17 = vpop.f32.mrf.mxu0 }
 0x121   :  { %v212_v18 = vpack.c.bf16 %v180_v17, %v177_v15  ;;  %895 = vmatpush3.bf16.msk.msra.mxu1 %vm1135_vm14, %v1034_v57 }
 0x122   :  { %v818_v20 = vpop.f32.mrf.mxu0  ;;  %888 = vmatprep.subr.msk.bf16.mxu1 %vm1145_vm1, %v1034_v57 }
 0x123   :  { %844 = vmatprep.mubr.bf16.mxu1 %v212_v18 }
 0x124   :  { %v193_v21 = vpop.f32.mrf.mxu0  ;;  %845 = vmatmul.mubr.bf16.gmra.mxu1 %v213_v19 }
 0x125   :  { %896 = vmatpush3.bf16.msk.msra.mxu1 %vm1145_vm1, %v1034_v57 }
 0x126   :  { %v819_v22 = vpop.f32.mrf.mxu0  ;;  %889 = vmatprep.subr.msk.bf16.mxu1 %vm1157_vm6, %v1034_v57 }
 0x127   :  { %v215_v25 = vpack.c.bf16 %v819_v22, %v818_v20 }
 0x128   :  { %v196_v23 = vpop.f32.mrf.mxu0 }
 0x129   :  { %v214_v24 = vpack.c.bf16 %v196_v23, %v193_v21  ;;  %897 = vmatpush3.bf16.msk.msra.mxu1 %vm1157_vm6, %v1034_v57 }
 0x12a   :  { %890 = vmatprep.subr.msk.bf16.mxu1 %vm1169_vm10, %v1034_v57  ;;  %v870_v26 = vpop.f32.mrf.mxu0 }
 0x12b   :  { %848 = vmatprep.mubr.bf16.mxu1 %v214_v24  ;;  %vm571_vm12 = vcmp.ne.f32.partialorder %v870_v26, 0.0 }
 0x12c   :  { %849 = vmatmul.mubr.bf16.gmra.mxu1 %v215_v25  ;;  %v506_v27 = vpop.f32.mrf.mxu0  ;;  %v726_v14 = vsel %vm571_vm12, 1.0, %v1035_v29 }
 0x12d   :  { %898 = vmatpush3.bf16.msk.msra.mxu1 %vm1169_vm10, %v1034_v57  ;;  %876 = vmatprep.mubr.msk.bf16.mxu1 %vm1135_vm14, %v1034_v57  ;;  %619 = vst [vmem:[#allocation9 + $0x10] sm:$0xff] %v726_v14 }
 0x12e   :  { %891 = vmatprep.subr.msk.bf16.mxu1 %vm1083_vm2, %v1034_v57  ;;  %v871_v28 = vpop.f32.mrf.mxu0 }
 0x12f   :  { %vm572_vm13 = vcmp.ne.f32.partialorder %v871_v28, 0.0 }
 0x130   :  { %v509_v30 = vpop.f32.mrf.mxu0  ;;  %v727_v32 = vsel %vm572_vm13, 1.0, %v1035_v29 }
 0x131   :  { %899 = vmatpush3.bf16.msk.msra.mxu1 %vm1083_vm2, %v1034_v57  ;;  %vm569_vm2 = vcmp.ne.f32.partialorder %v506_v27, 0.0  ;;  %620 = vst [vmem:[#allocation9 + $0x18] sm:$0xff] %v727_v32 }
 0x132   :  { %v724_v31 = vsel %vm569_vm2, 1.0, %v1035_v29  ;;  %v874_v34 = vpop.f32.mrf.mxu0 }
 0x133   :  { %617 = vst [vmem:[#allocation9] sm:$0xff] %v724_v31 }
 0x134   :  { %877 = vmatmul.mubr.msk.bf16.vlgmr.msra.gmra.mxu1 %vm1125_vm11, %v1034_v57  ;;  %vm570_vm11 = vcmp.ne.f32.partialorder %v509_v30, 0.0  ;;  %v522_v36 = vpop.f32.mrf.mxu0 }
 0x135   :  { %880 = vmatprep.mubr.msk.bf16.mxu1 %vm1112_vm8, %v1034_v57  ;;  %v725_v33 = vsel %vm570_vm11, 1.0, %v1035_v29  ;;  %vm573_vm8 = vcmp.ne.f32.partialorder %v522_v36, 0.0 }
 0x136   :  { %618 = vst [vmem:[#allocation9 + $0x8] sm:$0xff] %v725_v33  ;;  %v728_v37 = vsel %vm573_vm8, 1.0, %v1035_v29  ;;  %v875_v38 = vpop.f32.mrf.mxu0 }
 0x137   :  { %621 = vst [vmem:[#allocation9 + $0x20] sm:$0xff] %v728_v37  ;;  %vm576_vm14 = vcmp.ne.f32.partialorder %v875_v38, 0.0 }
 0x138   :  { %v731_v39 = vsel %vm576_vm14, 1.0, %v1035_v29  ;;  %v525_v40 = vpop.f32.mrf.mxu0 }
 0x139   :  { %624 = vst [vmem:[#allocation9 + $0x38] sm:$0xff] %v731_v39  ;;  %vm574_vm15 = vcmp.ne.f32.partialorder %v525_v40, 0.0 }
 0x13a   :  { %v729_v41 = vsel %vm574_vm15, 1.0, %v1035_v29 }
 0x13b   :  { %622 = vst [vmem:[#allocation9 + $0x28] sm:$0xff] %v729_v41 }
 0x13c   :  { %881 = vmatmul.mubr.msk.bf16.gmra.mxu1 %vm1099_vm5, %v1034_v57  ;;  %vm575_vm5 = vcmp.ne.f32.partialorder %v874_v34, 0.0 }
 0x13d   :  { %v730_v35 = vsel %vm575_vm5, 1.0, %v1035_v29 }
 0x13e   :  { %623 = vst [vmem:[#allocation9 + $0x30] sm:$0xff] %v730_v35 }
 0x1d4   :  { %v838_v43 = vpop.f32.mrf.mxu1 }
 0x1d5   :  { %v330_v44 = vadd.f32 %v838_v43, %v1262_v42 }
 0x1d6   :  { %v321_v45 = vpop.f32.mrf.mxu1 }
 0x1d7   :  { %v386_v46 = vmax.f32 %v330_v44, 0.0  ;;  %v322_v47 = vadd.f32 %v1262_v42, %v321_v45 }
 0x1d8   :  { %v839_v48 = vpop.f32.mrf.mxu1 }
 0x1d9   :  { %402 = vst [vmem:[#allocation8 + $0x10] sm:$0xff] %v386_v46  ;;  %v384_v49 = vmax.f32 %v322_v47, 0.0  ;;  %v333_v50 = vadd.f32 %v839_v48, %v1262_v42 }
 0x1da   :  { %v324_v51 = vpop.f32.mrf.mxu1 }
 0x1db   :  { %400 = vst [vmem:[#allocation8] sm:$0xff] %v384_v49  ;;  %v387_v52 = vmax.f32 %v333_v50, 0.0  ;;  %v325_v53 = vadd.f32 %v1262_v42, %v324_v51 }
 0x1dc   :  { %v842_v54 = vpop.f32.mrf.mxu1 }
 0x1dd   :  { %403 = vst [vmem:[#allocation8 + $0x18] sm:$0xff] %v387_v52  ;;  %v385_v55 = vmax.f32 %v325_v53, 0.0  ;;  %v346_v56 = vadd.f32 %v842_v54, %v1262_v42 }
 0x1de   :  { %v337_v57 = vpop.f32.mrf.mxu1 }
 0x1df   :  { %401 = vst [vmem:[#allocation8 + $0x8] sm:$0xff] %v385_v55  ;;  %v390_v58 = vmax.f32 %v346_v56, 0.0  ;;  %v338_v59 = vadd.f32 %v1262_v42, %v337_v57 }
 0x1e0   :  { %v843_v60 = vpop.f32.mrf.mxu1 }
 0x1e1   :  { %406 = vst [vmem:[#allocation8 + $0x30] sm:$0xff] %v390_v58  ;;  %v388_v61 = vmax.f32 %v338_v59, 0.0  ;;  %v349_v62 = vadd.f32 %v843_v60, %v1262_v42 }
 0x1e2   :  { %v340_v63 = vpop.f32.mrf.mxu1 }
 0x1e3   :  { %404 = vst [vmem:[#allocation8 + $0x20] sm:$0xff] %v388_v61  ;;  %v391_v0 = vmax.f32 %v349_v62, 0.0  ;;  %v341_v1 = vadd.f32 %v1262_v42, %v340_v63 }
 0x1e4   :  { %v846_v2 = vpop.f32.mrf.mxu1 }
 0x1e5   :  { %407 = vst [vmem:[#allocation8 + $0x38] sm:$0xff] %v391_v0  ;;  %v389_v3 = vmax.f32 %v341_v1, 0.0  ;;  %v362_v4 = vadd.f32 %v846_v2, %v1262_v42 }
 0x1e6   :  { %v353_v5 = vpop.f32.mrf.mxu1 }
 0x1e7   :  { %405 = vst [vmem:[#allocation8 + $0x28] sm:$0xff] %v389_v3  ;;  %v394_v6 = vmax.f32 %v362_v4, 0.0  ;;  %v354_v7 = vadd.f32 %v1262_v42, %v353_v5 }
 0x1e8   :  { %v847_v8 = vpop.f32.mrf.mxu1 }
 0x1e9   :  { %410 = vst [vmem:[#allocation8 + $0x50] sm:$0xff] %v394_v6  ;;  %v392_v9 = vmax.f32 %v354_v7, 0.0  ;;  %v365_v10 = vadd.f32 %v847_v8, %v1262_v42 }
 0x1ea   :  { %v356_v11 = vpop.f32.mrf.mxu1 }
 0x1eb   :  { %408 = vst [vmem:[#allocation8 + $0x40] sm:$0xff] %v392_v9  ;;  %v395_v12 = vmax.f32 %v365_v10, 0.0  ;;  %v357_v13 = vadd.f32 %v1262_v42, %v356_v11 }
 0x1ec   :  { %v850_v15 = vpop.f32.mrf.mxu1 }
 0x1ed   :  { %411 = vst [vmem:[#allocation8 + $0x58] sm:$0xff] %v395_v12  ;;  %v393_v16 = vmax.f32 %v357_v13, 0.0  ;;  %v378_v17 = vadd.f32 %v850_v15, %v1262_v42 }
 0x1ee   :  { %v369_v18 = vpop.f32.mrf.mxu1 }
 0x1ef   :  { %409 = vst [vmem:[#allocation8 + $0x48] sm:$0xff] %v393_v16  ;;  %v398_v19 = vmax.f32 %v378_v17, 0.0  ;;  %v370_v20 = vadd.f32 %v1262_v42, %v369_v18 }
 0x1f0   :  { %v851_v21 = vpop.f32.mrf.mxu1 }
 0x1f1   :  { %414 = vst [vmem:[#allocation8 + $0x70] sm:$0xff] %v398_v19  ;;  %v396_v22 = vmax.f32 %v370_v20, 0.0  ;;  %v381_v23 = vadd.f32 %v851_v21, %v1262_v42 }
 0x1f2   :  { %v372_v24 = vpop.f32.mrf.mxu1 }
 0x1f3   :  { %412 = vst [vmem:[#allocation8 + $0x60] sm:$0xff] %v396_v22  ;;  %v399_v25 = vmax.f32 %v381_v23, 0.0  ;;  %v373_v26 = vadd.f32 %v1262_v42, %v372_v24 }
 0x1f4   :  { %v878_v27 = vpop.f32.mrf.mxu1 }
 0x1f5   :  { %415 = vst [vmem:[#allocation8 + $0x78] sm:$0xff] %v399_v25  ;;  %v397_v28 = vmax.f32 %v373_v26, 0.0  ;;  %vm579_vm0 = vcmp.ne.f32.partialorder %v878_v27, 0.0 }
 0x1f6   :  { %v734_v14 = vsel %vm579_vm0, 1.0, %v1035_v29  ;;  %v538_v30 = vpop.f32.mrf.mxu1 }
 0x1f7   :  { %413 = vst [vmem:[#allocation8 + $0x68] sm:$0xff] %v397_v28  ;;  %627 = vst [vmem:[#allocation9 + $0x50] sm:$0xff] %v734_v14  ;;  %vm577_vm1 = vcmp.ne.f32.partialorder %v538_v30, 0.0 }
 0x1f8   :  { %v732_v31 = vsel %vm577_vm1, 1.0, %v1035_v29  ;;  %v879_v32 = vpop.f32.mrf.mxu1 }
 0x1f9   :  { %990 = shalt.err (!%p987_p5)
}
 0x1fa   :  { %644 = dma.vmem_to_hbm [thread:$0]  %s639_s11, 2048, %s1304_s4, [#allocation4], %s1029_s23, %s1029_s23, %s1030_s24   ;;  %625 = vst [vmem:[#allocation9 + $0x40] sm:$0xff] %v732_v31  ;;  %vm580_vm3 = vcmp.ne.f32.partialorder %v879_v32, 0.0  ;;  %v541_v34 = vpop.f32.mrf.mxu1 }
 0x1fb   :  { %v735_v33 = vsel %vm580_vm3, 1.0, %v1035_v29  ;;  %vm578_vm4 = vcmp.ne.f32.partialorder %v541_v34, 0.0  ;;  %s1037_s4 = smov [#allocation9]  }
 0x1fc   :  { %628 = vst [vmem:[#allocation9 + $0x58] sm:$0xff] %v735_v33  ;;  %v733_v35 = vsel %vm578_vm4, 1.0, %v1035_v29  ;;  %v882_v36 = vpop.f32.mrf.mxu1  ;;  %s650_s15 = sshll.u32 %s1037_s4, 4  ;;  %s651_s15 = int_to_ptr.vmem [resolvable:$true] %s650_s15 }
 0x1fd   :  { %626 = vst [vmem:[#allocation9 + $0x48] sm:$0xff] %v733_v35  ;;  %vm583_vm6 = vcmp.ne.f32.partialorder %v882_v36, 0.0  ;;  %s999_s16 = scalar_lea.vmem %s651_s15, 2048  ;;  %p1004_p7 = scmp.lt.s32.totalorder %s651_s15, %s651_s15 }
 0x1fe   :  { %v738_v37 = vsel %vm583_vm6, 1.0, %v1035_v29  ;;  %v554_v38 = vpop.f32.mrf.mxu1  ;;  %p1000_p6 = scmp.ne.s32.totalorder %s651_s15, %s999_s16  ;;  %p1005_p8 = scmp.lt.s32.totalorder %s999_s16, %s999_s16 }
 0x1ff   :  { %631 = vst [vmem:[#allocation9 + $0x70] sm:$0xff] %v738_v37  ;;  %vm581_vm7 = vcmp.ne.f32.partialorder %v554_v38, 0.0 }
 0x200   :  { %v736_v39 = vsel %vm581_vm7, 1.0, %v1035_v29  ;;  %v883_v40 = vpop.f32.mrf.mxu1  ;;  %p1006_p9 = por %p1005_p8, %p1004_p7 }
 0x201   :  { %629 = vst [vmem:[#allocation9 + $0x60] sm:$0xff] %v736_v39  ;;  %vm584_vm9 = vcmp.ne.f32.partialorder %v883_v40, 0.0 }
 0x202   :  { %v739_v41 = vsel %vm584_vm9, 1.0, %v1035_v29  ;;  %v557_v42 = vpop.f32.mrf.mxu1  ;;  %p1007_p10 = pnand %p1006_p9, %p1000_p6 }
 0x203   :  { %632 = vst [vmem:[#allocation9 + $0x78] sm:$0xff] %v739_v41  ;;  %vm582_vm10 = vcmp.ne.f32.partialorder %v557_v42, 0.0 }
 0x204   :  { %v737_v43 = vsel %vm582_vm10, 1.0, %v1035_v29 }
 0x205   :  { %630 = vst [vmem:[#allocation9 + $0x68] sm:$0xff] %v737_v43 }
 0x206   :  { %1010 = shalt.err (!%p1007_p10)
}
 0x207   :  { %656 = dma.vmem_to_hbm [thread:$0]  %s651_s15, 2048, %s1305_s5, [#allocation10], %s1029_s23, %s1029_s23, %s1030_s24  }
 0x208   :  { %1023 = dma.done.wait [#allocation4], 2048  }
 0x209   :  { %1024 = vsyncadd [#allocation4], 4294965248 }
 0x20a   :  { %1025 = dma.done.wait [#allocation10], 2048  }
 0x20b   :  { %1026 = vsyncadd [#allocation10], 4294965248 }
 0x20c   :  { %663 = vsyncpa [#allocation3], 1 }
 0x20d   :  { %664 = vsyncpa [#allocation6], 1 }
 0x20e   :  { %665 = vsyncpa [#allocation4], 1 }
 0x20f   :  { %666 = vsyncpa [#allocation10], 1 }

</bundles_post_ra>
